<compile_context>
chip_gen: v7x
topology: tpu7x:2x2x1
jax: 0.10.0
libtpu: 0.0.40
codegen_flags: <defaults>
</compile_context>

<pallas_src>
import jax
import jax.numpy as jnp
from jax.experimental import pallas as pl
from jax.experimental.pallas import tpu as pltpu

EMB = 32
HEADS = 4
SEQ = 8
BATCH = 2
FF_MULT = 4
EPS = 1e-5  # nn.LayerNorm default


def _layernorm(x, gamma, beta):
    mu = jnp.mean(x, axis=-1, keepdims=True)
    var = jnp.mean((x - mu) ** 2, axis=-1, keepdims=True)
    return (x - mu) * jax.lax.rsqrt(var + EPS) * gamma + beta


def encoder_layer_kernel(x_ref, mask_ref, wqkv_ref, wu_ref, w1_ref, w2_ref,
                         vec_ref, o_ref):
    # x_ref: (1, M, E) with M = BB*T  (chunk of BB batches fused into M)
    m = x_ref.shape[1]
    e = x_ref.shape[2]
    t = mask_ref.shape[0]
    bb = m // t
    h = wqkv_ref.shape[0] // 3
    zh = h * bb
    scale = 1.0 / (e ** 0.5)        # == (emb**-0.25 on q) * (emb**-0.25 on k)

    x = x_ref[0]                                        # (M, E)

    # packed biases / LayerNorm params (one (8,128) buffer)
    vec = vec_ref[...]
    b_u = vec[0:1, :e]
    g1 = vec[1:2, :e]
    be1 = vec[2:3, :e]
    b1 = vec[3:4, :]
    b2 = vec[4:5, :e]
    g2 = vec[5:6, :e]
    be2 = vec[6:7, :e]

    # ---- multi-head self-attention -----------------------------------------
    # Batched head projections: single dot_general whose batch dim z runs over
    # (part in {q,k,v}, head, batch). No lane slicing of activations, no concat.
    if bb == 1:
        xz = jnp.broadcast_to(x[None], (3 * h, t, e))                  # (3H, T, E)
        wz = wqkv_ref[...]                                             # (3H, E, E)
    else:
        x3 = x.reshape(bb, t, e)
        xz = jnp.broadcast_to(x3[None], (3 * h, bb, t, e)).reshape(3 * h * bb, t, e)
        wz = jnp.broadcast_to(wqkv_ref[...][:, None],
                              (3 * h, bb, e, e)).reshape(3 * h * bb, e, e)

    qkv = jnp.einsum('zte,zef->ztf', xz, wz,
                     preferred_element_type=jnp.float32)               # (3*ZH, T, E)
    q = qkv[:zh]
    k = qkv[zh:2 * zh]
    v = qkv[2 * zh:]

    scores = jnp.einsum('zqd,zkd->zqk', q, k,
                        preferred_element_type=jnp.float32) * scale    # (ZH, T, T)
    # mask handled once for all heads (masked_fill(mask == 0, -1e9))
    scores = jnp.where(mask_ref[...][None] == 0, -1e9, scores)
    scores = scores - jnp.max(scores, axis=-1, keepdims=True)
    p = jnp.exp(scores)
    p = p * pl.reciprocal(jnp.sum(p, axis=-1, keepdims=True), approx=True)
    attn = jnp.einsum('zqk,zkd->zqd', p, v,
                      preferred_element_type=jnp.float32)              # (ZH, T, E)

    # unify heads:  concat_h(attn_h) @ Wu  ==  sum_h attn_h @ Wu_h  (no concat)
    wu = wu_ref[...]                                                   # (H*E, E)
    attended = None
    for hd in range(h):
        part = attn[hd * bb:(hd + 1) * bb].reshape(m, e)
        c = jnp.dot(part, wu[hd * e:(hd + 1) * e, :],
                    preferred_element_type=jnp.float32)
        attended = c if attended is None else attended + c
    attended = attended + b_u                                          # (M, E)

    # residual + LayerNorm 1   (dropout p=0.0 -> identity)
    y = _layernorm(attended + x, g1, be1)

    # FFN: Linear -> ReLU -> Linear
    hid = jnp.dot(y, w1_ref[...], preferred_element_type=jnp.float32) + b1
    hid = jnp.maximum(hid, 0.0)
    ff = jnp.dot(hid, w2_ref[...], preferred_element_type=jnp.float32) + b2

    # residual + LayerNorm 2   (dropout p=0.0 -> identity)
    o_ref[0] = _layernorm(ff + y, g2, be2).astype(o_ref.dtype)


def pack_params(params, emb=EMB, heads=HEADS, ff_mult=FF_MULT):
    (wq, wk, wv, wu, bu, g1, be1, w1, b1, w2, b2, g2, be2) = params

    def per_head(w):                      # (E, H*E) -> (H, E, E)
        return w.reshape(emb, heads, emb).transpose(1, 0, 2)

    w_qkv = jnp.concatenate([per_head(wq), per_head(wk), per_head(wv)], axis=0)

    assert emb <= 128 and ff_mult * emb <= 128, "bias packing assumes <=128 lanes"
    vec = jnp.zeros((8, 128), jnp.float32)
    vec = vec.at[0, :emb].set(bu[0])
    vec = vec.at[1, :emb].set(g1[0])
    vec = vec.at[2, :emb].set(be1[0])
    vec = vec.at[3, :ff_mult * emb].set(b1[0])
    vec = vec.at[4, :emb].set(b2[0])
    vec = vec.at[5, :emb].set(g2[0])
    vec = vec.at[6, :emb].set(be2[0])
    return (w_qkv, wu, w1, w2, vec)


def encoder_layer(x, mask, params):
    b, t, e = x.shape
    heads = HEADS
    w_qkv, wu, w1, w2, vec = pack_params(params)

    # <=2 grid steps: one chunk of BB batches per v7x TensorCore; within a
    # chunk all batches are fused into the matmul M dimension.
    nc = 2 if (b % 2 == 0 and b >= 2) else 1
    bb = b // nc
    m = bb * t
    x2 = x.reshape(nc, m, e)

    out = pl.pallas_call(
        encoder_layer_kernel,
        out_shape=jax.ShapeDtypeStruct((nc, m, e), x.dtype),
        grid=(nc,),
        in_specs=[
            pl.BlockSpec((1, m, e), lambda i: (i, 0, 0)),       # x chunk
            pl.BlockSpec((t, t), lambda i: (0, 0)),             # mask
            pl.BlockSpec((3 * heads, e, e), lambda i: (0, 0, 0)),  # Wq|Wk|Wv per head
            pl.BlockSpec((heads * e, e), lambda i: (0, 0)),     # W_unify
            pl.BlockSpec((e, FF_MULT * e), lambda i: (0, 0)),   # FFN W1
            pl.BlockSpec((FF_MULT * e, e), lambda i: (0, 0)),   # FFN W2
            pl.BlockSpec((8, 128), lambda i: (0, 0)),           # packed biases/LN
        ],
        out_specs=pl.BlockSpec((1, m, e), lambda i: (i, 0, 0)),
        compiler_params=pltpu.CompilerParams(dimension_semantics=("parallel",)),
    )(x2, mask, w_qkv, wu, w1, w2, vec)
    return out.reshape(b, t, e)


def init_params(key, emb=EMB, heads=HEADS, ff_mult=FF_MULT):
    ks = jax.random.split(key, 8)
    s = 0.05
    wq = s * jax.random.normal(ks[0], (emb, heads * emb), jnp.float32)
    wk = s * jax.random.normal(ks[1], (emb, heads * emb), jnp.float32)
    wv = s * jax.random.normal(ks[2], (emb, heads * emb), jnp.float32)
    wu = s * jax.random.normal(ks[3], (heads * emb, emb), jnp.float32)
    bu = s * jax.random.normal(ks[4], (1, emb), jnp.float32)
    g1 = jnp.ones((1, emb), jnp.float32)        # LayerNorm default init
    be1 = jnp.zeros((1, emb), jnp.float32)
    w1 = s * jax.random.normal(ks[5], (emb, ff_mult * emb), jnp.float32)
    b1 = s * jax.random.normal(ks[6], (1, ff_mult * emb), jnp.float32)
    w2 = s * jax.random.normal(ks[7], (ff_mult * emb, emb), jnp.float32)
    b2 = jnp.zeros((1, emb), jnp.float32)
    g2 = jnp.ones((1, emb), jnp.float32)
    be2 = jnp.zeros((1, emb), jnp.float32)
    return (wq, wk, wv, wu, bu, g1, be1, w1, b1, w2, b2, g2, be2)


if __name__ == "__main__":
    key = jax.random.PRNGKey(0)
    kx, kp = jax.random.split(key)
    x = jax.random.normal(kx, (BATCH, SEQ, EMB), jnp.float32)
    mask = jnp.ones((SEQ, SEQ), jnp.float32)    # all-ones => no positions masked
    params = init_params(kp)

    out = encoder_layer(x, mask, params)
    jax.block_until_ready(out)
    assert out.shape == (BATCH, SEQ, EMB)
    assert bool(jnp.all(jnp.isfinite(out)))
    print("KERNEL_OK")
</pallas_src>

<mosaic_0001>
module attributes {stable_mosaic.version = 11 : i64} {
  func.func @encoder_layer_kernel(%arg0: i32, %arg1: memref<1x8x32xf32, #tpu.memory_space<vmem>>, %arg2: memref<8x8xf32, #tpu.memory_space<vmem>>, %arg3: memref<12x32x32xf32, #tpu.memory_space<vmem>>, %arg4: memref<128x32xf32, #tpu.memory_space<vmem>>, %arg5: memref<32x128xf32, #tpu.memory_space<vmem>>, %arg6: memref<128x32xf32, #tpu.memory_space<vmem>>, %arg7: memref<8x128xf32, #tpu.memory_space<vmem>>, %arg8: memref<1x8x32xf32, #tpu.memory_space<vmem>>) attributes {dimension_semantics = [#tpu.dimension_semantics<parallel>], iteration_bounds = array<i64: 2>, scalar_prefetch = 0 : i64, scratch_operands = 0 : i64, tpu.core_type = #tpu.core_type<tc>, window_params = [{transform_indices = @transform_0, window_bounds = array<i64: 1, 8, 32>}, {pipeline_mode = #tpu.pipeline_mode<synchronous>, transform_indices = @transform_1, window_bounds = array<i64: 8, 8>}, {pipeline_mode = #tpu.pipeline_mode<synchronous>, transform_indices = @transform_2, window_bounds = array<i64: 12, 32, 32>}, {pipeline_mode = #tpu.pipeline_mode<synchronous>, transform_indices = @transform_3, window_bounds = array<i64: 128, 32>}, {pipeline_mode = #tpu.pipeline_mode<synchronous>, transform_indices = @transform_4, window_bounds = array<i64: 32, 128>}, {pipeline_mode = #tpu.pipeline_mode<synchronous>, transform_indices = @transform_5, window_bounds = array<i64: 128, 32>}, {pipeline_mode = #tpu.pipeline_mode<synchronous>, transform_indices = @transform_6, window_bounds = array<i64: 8, 128>}, {transform_indices = @transform_7, window_bounds = array<i64: 1, 8, 32>}]} {
    %c0 = arith.constant 0 : index
    %c0_0 = arith.constant 0 : index
    %c0_1 = arith.constant 0 : index
    %0 = vector.load %arg1[%c0, %c0_0, %c0_1] : memref<1x8x32xf32, #tpu.memory_space<vmem>>, vector<1x8x32xf32>
    %1 = vector.shape_cast %0 : vector<1x8x32xf32> to vector<8x32xf32>
    %c0_2 = arith.constant 0 : index
    %c0_3 = arith.constant 0 : index
    %2 = vector.load %arg7[%c0_2, %c0_3] : memref<8x128xf32, #tpu.memory_space<vmem>>, vector<8x128xf32>
    %3 = vector.extract_strided_slice %2 {offsets = [0, 0], sizes = [1, 32], strides = [1, 1]} : vector<8x128xf32> to vector<1x32xf32>
    %4 = vector.extract_strided_slice %2 {offsets = [1, 0], sizes = [1, 32], strides = [1, 1]} : vector<8x128xf32> to vector<1x32xf32>
    %5 = vector.extract_strided_slice %2 {offsets = [2, 0], sizes = [1, 32], strides = [1, 1]} : vector<8x128xf32> to vector<1x32xf32>
    %6 = vector.extract_strided_slice %2 {offsets = [3, 0], sizes = [1, 128], strides = [1, 1]} : vector<8x128xf32> to vector<1x128xf32>
    %7 = vector.extract_strided_slice %2 {offsets = [4, 0], sizes = [1, 32], strides = [1, 1]} : vector<8x128xf32> to vector<1x32xf32>
    %8 = vector.extract_strided_slice %2 {offsets = [5, 0], sizes = [1, 32], strides = [1, 1]} : vector<8x128xf32> to vector<1x32xf32>
    %9 = vector.extract_strided_slice %2 {offsets = [6, 0], sizes = [1, 32], strides = [1, 1]} : vector<8x128xf32> to vector<1x32xf32>
    %10 = vector.shape_cast %1 : vector<8x32xf32> to vector<1x8x32xf32>
    %11 = vector.shape_cast %10 : vector<1x8x32xf32> to vector<1x8x32xf32>
    %12 = vector.broadcast %11 : vector<1x8x32xf32> to vector<12x8x32xf32>
    %c0_4 = arith.constant 0 : index
    %c0_5 = arith.constant 0 : index
    %c0_6 = arith.constant 0 : index
    %13 = vector.load %arg3[%c0_4, %c0_5, %c0_6] : memref<12x32x32xf32, #tpu.memory_space<vmem>>, vector<12x32x32xf32>
    "tpu.trace_start"() <{level = 10 : i32, message = "zte,zef->ztf"}> : () -> ()
    %cst = arith.constant dense<0.000000e+00> : vector<12x8x32xf32>
    %14 = tpu.matmul %12, %13, %cst {dimension_numbers = #tpu.dot_dimension_numbers<[2], [1], [1], [2], [0, 0, 0, 1, 1, 2], [0], [0]>} : vector<12x8x32xf32>, vector<12x32x32xf32>, vector<12x8x32xf32> -> vector<12x8x32xf32>
    "tpu.trace_stop"() : () -> ()
    %15 = vector.extract_strided_slice %14 {offsets = [0, 0, 0], sizes = [4, 8, 32], strides = [1, 1, 1]} : vector<12x8x32xf32> to vector<4x8x32xf32>
    %16 = vector.extract_strided_slice %14 {offsets = [4, 0, 0], sizes = [4, 8, 32], strides = [1, 1, 1]} : vector<12x8x32xf32> to vector<4x8x32xf32>
    %17 = vector.extract_strided_slice %14 {offsets = [8, 0, 0], sizes = [4, 8, 32], strides = [1, 1, 1]} : vector<12x8x32xf32> to vector<4x8x32xf32>
    "tpu.trace_start"() <{level = 10 : i32, message = "zqd,zkd->zqk"}> : () -> ()
    %cst_7 = arith.constant dense<0.000000e+00> : vector<4x8x8xf32>
    %18 = tpu.matmul %15, %16, %cst_7 {dimension_numbers = #tpu.dot_dimension_numbers<[2], [2], [1], [1], [0, 0, 0, 1, 1, 1], [0], [0]>} : vector<4x8x32xf32>, vector<4x8x32xf32>, vector<4x8x8xf32> -> vector<4x8x8xf32>
    "tpu.trace_stop"() : () -> ()
    %cst_8 = arith.constant 0.176776692 : f32
    %19 = vector.broadcast %cst_8 : f32 to vector<4x8x8xf32>
    %20 = arith.mulf %18, %19 : vector<4x8x8xf32>
    %c0_9 = arith.constant 0 : index
    %c0_10 = arith.constant 0 : index
    %21 = vector.load %arg2[%c0_9, %c0_10] : memref<8x8xf32, #tpu.memory_space<vmem>>, vector<8x8xf32>
    %22 = vector.shape_cast %21 : vector<8x8xf32> to vector<1x8x8xf32>
    %cst_11 = arith.constant 0.000000e+00 : f32
    %23 = vector.broadcast %cst_11 : f32 to vector<1x8x8xf32>
    %24 = arith.cmpf oeq, %22, %23 : vector<1x8x8xf32>
    %cst_12 = arith.constant -1.000000e+09 : f32
    %25 = vector.shape_cast %24 : vector<1x8x8xi1> to vector<1x8x8xi1>
    %26 = vector.broadcast %25 : vector<1x8x8xi1> to vector<4x8x8xi1>
    %27 = vector.broadcast %cst_12 : f32 to vector<4x8x8xf32>
    %28 = arith.select %26, %27, %20 : vector<4x8x8xi1>, vector<4x8x8xf32>
    %cst_13 = arith.constant dense<0xFF800000> : vector<4x8xf32>
    %29 = vector.multi_reduction <maximumf>, %28, %cst_13 [2] : vector<4x8x8xf32> to vector<4x8xf32>
    %30 = vector.shape_cast %29 : vector<4x8xf32> to vector<4x8x1xf32>
    %31 = vector.broadcast %30 : vector<4x8x1xf32> to vector<4x8x8xf32>
    %32 = arith.subf %28, %31 : vector<4x8x8xf32>
    %33 = math.exp %32 : vector<4x8x8xf32>
    %cst_14 = arith.constant dense<0.000000e+00> : vector<4x8xf32>
    %34 = vector.multi_reduction <add>, %33, %cst_14 [2] : vector<4x8x8xf32> to vector<4x8xf32>
    %35 = vector.shape_cast %34 : vector<4x8xf32> to vector<4x8x1xf32>
    %36 = tpu.reciprocal %35 {approx = true} : vector<4x8x1xf32> -> vector<4x8x1xf32>
    %37 = vector.broadcast %36 : vector<4x8x1xf32> to vector<4x8x8xf32>
    %38 = arith.mulf %33, %37 : vector<4x8x8xf32>
    "tpu.trace_start"() <{level = 10 : i32, message = "zqk,zkd->zqd"}> : () -> ()
    %cst_15 = arith.constant dense<0.000000e+00> : vector<4x8x32xf32>
    %39 = tpu.matmul %38, %17, %cst_15 {dimension_numbers = #tpu.dot_dimension_numbers<[2], [1], [1], [2], [0, 0, 0, 1, 1, 2], [0], [0]>} : vector<4x8x8xf32>, vector<4x8x32xf32>, vector<4x8x32xf32> -> vector<4x8x32xf32>
    "tpu.trace_stop"() : () -> ()
    %c0_16 = arith.constant 0 : index
    %c0_17 = arith.constant 0 : index
    %40 = vector.load %arg4[%c0_16, %c0_17] : memref<128x32xf32, #tpu.memory_space<vmem>>, vector<128x32xf32>
    %41 = vector.extract_strided_slice %39 {offsets = [0, 0, 0], sizes = [1, 8, 32], strides = [1, 1, 1]} : vector<4x8x32xf32> to vector<1x8x32xf32>
    %42 = vector.shape_cast %41 : vector<1x8x32xf32> to vector<8x32xf32>
    %43 = vector.extract_strided_slice %40 {offsets = [0, 0], sizes = [32, 32], strides = [1, 1]} : vector<128x32xf32> to vector<32x32xf32>
    %cst_18 = arith.constant dense<0.000000e+00> : vector<8x32xf32>
    %44 = tpu.matmul %42, %43, %cst_18 {dimension_numbers = #tpu.dot_dimension_numbers<[1], [0], [0], [1], [0, 0, 1, 1], [], []>} : vector<8x32xf32>, vector<32x32xf32>, vector<8x32xf32> -> vector<8x32xf32>
    %45 = vector.extract_strided_slice %39 {offsets = [1, 0, 0], sizes = [1, 8, 32], strides = [1, 1, 1]} : vector<4x8x32xf32> to vector<1x8x32xf32>
    %46 = vector.shape_cast %45 : vector<1x8x32xf32> to vector<8x32xf32>
    %47 = vector.extract_strided_slice %40 {offsets = [32, 0], sizes = [32, 32], strides = [1, 1]} : vector<128x32xf32> to vector<32x32xf32>
    %cst_19 = arith.constant dense<0.000000e+00> : vector<8x32xf32>
    %48 = tpu.matmul %46, %47, %cst_19 {dimension_numbers = #tpu.dot_dimension_numbers<[1], [0], [0], [1], [0, 0, 1, 1], [], []>} : vector<8x32xf32>, vector<32x32xf32>, vector<8x32xf32> -> vector<8x32xf32>
    %49 = arith.addf %44, %48 : vector<8x32xf32>
    %50 = vector.extract_strided_slice %39 {offsets = [2, 0, 0], sizes = [1, 8, 32], strides = [1, 1, 1]} : vector<4x8x32xf32> to vector<1x8x32xf32>
    %51 = vector.shape_cast %50 : vector<1x8x32xf32> to vector<8x32xf32>
    %52 = vector.extract_strided_slice %40 {offsets = [64, 0], sizes = [32, 32], strides = [1, 1]} : vector<128x32xf32> to vector<32x32xf32>
    %cst_20 = arith.constant dense<0.000000e+00> : vector<8x32xf32>
    %53 = tpu.matmul %51, %52, %cst_20 {dimension_numbers = #tpu.dot_dimension_numbers<[1], [0], [0], [1], [0, 0, 1, 1], [], []>} : vector<8x32xf32>, vector<32x32xf32>, vector<8x32xf32> -> vector<8x32xf32>
    %54 = arith.addf %49, %53 : vector<8x32xf32>
    %55 = vector.extract_strided_slice %39 {offsets = [3, 0, 0], sizes = [1, 8, 32], strides = [1, 1, 1]} : vector<4x8x32xf32> to vector<1x8x32xf32>
    %56 = vector.shape_cast %55 : vector<1x8x32xf32> to vector<8x32xf32>
    %57 = vector.extract_strided_slice %40 {offsets = [96, 0], sizes = [32, 32], strides = [1, 1]} : vector<128x32xf32> to vector<32x32xf32>
    %cst_21 = arith.constant dense<0.000000e+00> : vector<8x32xf32>
    %58 = tpu.matmul %56, %57, %cst_21 {dimension_numbers = #tpu.dot_dimension_numbers<[1], [0], [0], [1], [0, 0, 1, 1], [], []>} : vector<8x32xf32>, vector<32x32xf32>, vector<8x32xf32> -> vector<8x32xf32>
    %59 = arith.addf %54, %58 : vector<8x32xf32>
    %60 = vector.broadcast %3 : vector<1x32xf32> to vector<8x32xf32>
    %61 = arith.addf %59, %60 : vector<8x32xf32>
    %62 = arith.addf %61, %1 : vector<8x32xf32>
    %cst_22 = arith.constant dense<0.000000e+00> : vector<8xf32>
    %63 = vector.multi_reduction <add>, %62, %cst_22 [1] : vector<8x32xf32> to vector<8xf32>
    %64 = vector.shape_cast %63 : vector<8xf32> to vector<8x1xf32>
    %cst_23 = arith.constant 3.200000e+01 : f32
    %65 = vector.broadcast %cst_23 : f32 to vector<8x1xf32>
    %66 = arith.divf %64, %65 : vector<8x1xf32>
    %67 = vector.broadcast %66 : vector<8x1xf32> to vector<8x32xf32>
    %68 = arith.subf %62, %67 : vector<8x32xf32>
    %69 = arith.mulf %68, %68 : vector<8x32xf32>
    %cst_24 = arith.constant dense<0.000000e+00> : vector<8xf32>
    %70 = vector.multi_reduction <add>, %69, %cst_24 [1] : vector<8x32xf32> to vector<8xf32>
    %71 = vector.shape_cast %70 : vector<8xf32> to vector<8x1xf32>
    %cst_25 = arith.constant 3.200000e+01 : f32
    %72 = vector.broadcast %cst_25 : f32 to vector<8x1xf32>
    %73 = arith.divf %71, %72 : vector<8x1xf32>
    %74 = vector.broadcast %66 : vector<8x1xf32> to vector<8x32xf32>
    %75 = arith.subf %62, %74 : vector<8x32xf32>
    %cst_26 = arith.constant 9.99999974E-6 : f32
    %76 = vector.broadcast %cst_26 : f32 to vector<8x1xf32>
    %77 = arith.addf %73, %76 : vector<8x1xf32>
    %78 = math.rsqrt %77 : vector<8x1xf32>
    %79 = vector.broadcast %78 : vector<8x1xf32> to vector<8x32xf32>
    %80 = arith.mulf %75, %79 : vector<8x32xf32>
    %81 = vector.broadcast %4 : vector<1x32xf32> to vector<8x32xf32>
    %82 = arith.mulf %80, %81 : vector<8x32xf32>
    %83 = vector.broadcast %5 : vector<1x32xf32> to vector<8x32xf32>
    %84 = arith.addf %82, %83 : vector<8x32xf32>
    %c0_27 = arith.constant 0 : index
    %c0_28 = arith.constant 0 : index
    %85 = vector.load %arg5[%c0_27, %c0_28] : memref<32x128xf32, #tpu.memory_space<vmem>>, vector<32x128xf32>
    %cst_29 = arith.constant dense<0.000000e+00> : vector<8x128xf32>
    %86 = tpu.matmul %84, %85, %cst_29 {dimension_numbers = #tpu.dot_dimension_numbers<[1], [0], [0], [1], [0, 0, 1, 1], [], []>} : vector<8x32xf32>, vector<32x128xf32>, vector<8x128xf32> -> vector<8x128xf32>
    %87 = vector.broadcast %6 : vector<1x128xf32> to vector<8x128xf32>
    %88 = arith.addf %86, %87 : vector<8x128xf32>
    %cst_30 = arith.constant 0.000000e+00 : f32
    %89 = vector.broadcast %cst_30 : f32 to vector<8x128xf32>
    %90 = arith.maximumf %88, %89 : vector<8x128xf32>
    %c0_31 = arith.constant 0 : index
    %c0_32 = arith.constant 0 : index
    %91 = vector.load %arg6[%c0_31, %c0_32] : memref<128x32xf32, #tpu.memory_space<vmem>>, vector<128x32xf32>
    %cst_33 = arith.constant dense<0.000000e+00> : vector<8x32xf32>
    %92 = tpu.matmul %90, %91, %cst_33 {dimension_numbers = #tpu.dot_dimension_numbers<[1], [0], [0], [1], [0, 0, 1, 1], [], []>} : vector<8x128xf32>, vector<128x32xf32>, vector<8x32xf32> -> vector<8x32xf32>
    %93 = vector.broadcast %7 : vector<1x32xf32> to vector<8x32xf32>
    %94 = arith.addf %92, %93 : vector<8x32xf32>
    %95 = arith.addf %94, %84 : vector<8x32xf32>
    %cst_34 = arith.constant dense<0.000000e+00> : vector<8xf32>
    %96 = vector.multi_reduction <add>, %95, %cst_34 [1] : vector<8x32xf32> to vector<8xf32>
    %97 = vector.shape_cast %96 : vector<8xf32> to vector<8x1xf32>
    %cst_35 = arith.constant 3.200000e+01 : f32
    %98 = vector.broadcast %cst_35 : f32 to vector<8x1xf32>
    %99 = arith.divf %97, %98 : vector<8x1xf32>
    %100 = vector.broadcast %99 : vector<8x1xf32> to vector<8x32xf32>
    %101 = arith.subf %95, %100 : vector<8x32xf32>
    %102 = arith.mulf %101, %101 : vector<8x32xf32>
    %cst_36 = arith.constant dense<0.000000e+00> : vector<8xf32>
    %103 = vector.multi_reduction <add>, %102, %cst_36 [1] : vector<8x32xf32> to vector<8xf32>
    %104 = vector.shape_cast %103 : vector<8xf32> to vector<8x1xf32>
    %cst_37 = arith.constant 3.200000e+01 : f32
    %105 = vector.broadcast %cst_37 : f32 to vector<8x1xf32>
    %106 = arith.divf %104, %105 : vector<8x1xf32>
    %107 = vector.broadcast %99 : vector<8x1xf32> to vector<8x32xf32>
    %108 = arith.subf %95, %107 : vector<8x32xf32>
    %cst_38 = arith.constant 9.99999974E-6 : f32
    %109 = vector.broadcast %cst_38 : f32 to vector<8x1xf32>
    %110 = arith.addf %106, %109 : vector<8x1xf32>
    %111 = math.rsqrt %110 : vector<8x1xf32>
    %112 = vector.broadcast %111 : vector<8x1xf32> to vector<8x32xf32>
    %113 = arith.mulf %108, %112 : vector<8x32xf32>
    %114 = vector.broadcast %8 : vector<1x32xf32> to vector<8x32xf32>
    %115 = arith.mulf %113, %114 : vector<8x32xf32>
    %116 = vector.broadcast %9 : vector<1x32xf32> to vector<8x32xf32>
    %117 = arith.addf %115, %116 : vector<8x32xf32>
    %c0_39 = arith.constant 0 : index
    %c0_40 = arith.constant 0 : index
    %c0_41 = arith.constant 0 : index
    %118 = vector.load %arg8[%c0_39, %c0_40, %c0_41] : memref<1x8x32xf32, #tpu.memory_space<vmem>>, vector<1x8x32xf32>
    %119 = vector.shape_cast %118 : vector<1x8x32xf32> to vector<8x32xf32>
    %120 = vector.shape_cast %117 : vector<8x32xf32> to vector<1x8x32xf32>
    tpu.vector_store %arg8[%c0_39, %c0_40, %c0_41], %120 {strides = array<i32>} : memref<1x8x32xf32, #tpu.memory_space<vmem>>, vector<1x8x32xf32>,
    return
  }
  func.func @transform_0(%arg0: i32) -> (i32, i32, i32) {
    %c0_i32 = arith.constant 0 : i32
    %c0_i32_0 = arith.constant 0 : i32
    %c0_i32_1 = arith.constant 0 : i32
    return %arg0, %c0_i32, %c0_i32_0 : i32, i32, i32
  }
  func.func @transform_1(%arg0: i32) -> (i32, i32) {
    %c0_i32 = arith.constant 0 : i32
    %c0_i32_0 = arith.constant 0 : i32
    %c0_i32_1 = arith.constant 0 : i32
    return %c0_i32, %c0_i32_0 : i32, i32
  }
  func.func @transform_2(%arg0: i32) -> (i32, i32, i32) {
    %c0_i32 = arith.constant 0 : i32
    %c0_i32_0 = arith.constant 0 : i32
    %c0_i32_1 = arith.constant 0 : i32
    %c0_i32_2 = arith.constant 0 : i32
    return %c0_i32, %c0_i32_0, %c0_i32_1 : i32, i32, i32
  }
  func.func @transform_3(%arg0: i32) -> (i32, i32) {
    %c0_i32 = arith.constant 0 : i32
    %c0_i32_0 = arith.constant 0 : i32
    %c0_i32_1 = arith.constant 0 : i32
    return %c0_i32, %c0_i32_0 : i32, i32
  }
  func.func @transform_4(%arg0: i32) -> (i32, i32) {
    %c0_i32 = arith.constant 0 : i32
    %c0_i32_0 = arith.constant 0 : i32
    %c0_i32_1 = arith.constant 0 : i32
    return %c0_i32, %c0_i32_0 : i32, i32
  }
  func.func @transform_5(%arg0: i32) -> (i32, i32) {
    %c0_i32 = arith.constant 0 : i32
    %c0_i32_0 = arith.constant 0 : i32
    %c0_i32_1 = arith.constant 0 : i32
    return %c0_i32, %c0_i32_0 : i32, i32
  }
  func.func @transform_6(%arg0: i32) -> (i32, i32) {
    %c0_i32 = arith.constant 0 : i32
    %c0_i32_0 = arith.constant 0 : i32
    %c0_i32_1 = arith.constant 0 : i32
    return %c0_i32, %c0_i32_0 : i32, i32
  }
  func.func @transform_7(%arg0: i32) -> (i32, i32, i32) {
    %c0_i32 = arith.constant 0 : i32
    %c0_i32_0 = arith.constant 0 : i32
    %c0_i32_1 = arith.constant 0 : i32
    return %arg0, %c0_i32, %c0_i32_0 : i32, i32, i32
  }
}

</mosaic_0001>

<bundles_post_ra>
// kernel: tpu_custom_call.1
= control target key start
LH: loop header
LB: loop body
LE: loop exit
PB: predicated region body
PF: predicated region fallthrough
CT: control target
= control target key end

     0   :  { %12 = vsyncpa [#allocation3], 0  ;;  %s3655_s0 = inlined_call_operand.vmem [shape: f32[2,8,32], index: 0, kind: input, shape index: {}]   ;;  %s3656_s1 = inlined_call_operand.vmem [shape: f32[8,8], index: 1, kind: input, shape index: {}]   ;;  %s3657_s2 = inlined_call_operand.hbm [shape: f32[12,32,32], index: 2, kind: input, shape index: {}]   ;;  %s3658_s3 = inlined_call_operand.vmem [shape: f32[128,32], index: 3, kind: input, shape index: {}]   ;;  %s3659_s4 = inlined_call_operand.vmem [shape: f32[32,128], index: 4, kind: input, shape index: {}]   ;;  %s3660_s5 = inlined_call_operand.vmem [shape: f32[128,32], index: 5, kind: input, shape index: {}]   ;;  %s3661_s6 = inlined_call_operand.vmem [shape: f32[8,128], index: 6, kind: input, shape index: {}]   ;;  %s3662_s7 = inlined_call_operand.hbm [shape: f32[2,8,32], index: 7, kind: output, shape index: {}]  }
   0x1   :  { %13 = vsyncpa [#allocation4], 0 }
   0x2   :  { %15 = vsyncpa [#allocation4 + $0x1], 0  ;;  %s3223_s24 = smov 0   ;;  %s3225_s25 = smov 0  }
   0x3   :  { %s3227_s26 = smov 0   ;;  %s3229_s27 = smov 0  }
   0x4 LB: > { %s3244_s28 = sadd.s32 4294967295, %s3174_s27   ;;  %s2458_s29 = sadd.s32 4294967294, %s3174_s27   ;;  %s3174_s27 = sphi %s3229_s27, %s3678_s27   ;;  %s3170_s26 = sphi %s3227_s26, %s3677_s26   ;;  %s3166_s25 = sphi %s3225_s25, %s3676_s25   ;;  %s3162_s24 = sphi %s3223_s24, %s3675_s24  }
   0x5   : > { %s3248_s30 = sadd.s32 1, %s3174_s27   ;;  %s180_s8 = sadd.s32 1, %s3170_s26 }
   0x6   : > { %s177_s9 = ssub.s32 %s3174_s27, %s3248_s30  ;;  %p190_p0 = scmp.ne.s32.totalorder %s3170_s26, %s3166_s25 }
   0x7   : > { %p178_p1 = scmp.eq.s32.totalorder %s177_s9, 0  ;;  %p191_p2 = scmp.eq.s32.totalorder %s3244_s28, 1 }
   0x8   : > { %p196_p3 = scmp.ne.s32.totalorder %s3166_s25, %s3162_s24  ;;  %p197_p4 = scmp.eq.s32.totalorder %s2458_s29, 1 }
   0x9   : > { %s3259_s10 = scalar_select %p178_p1, %s3170_s26, %s180_s8  }
   0xa   : > { %p3261_p5 = por %p191_p2, %p190_p0  ;;  %p3265_p6 = por %p197_p4, %p196_p3 }
   0xb   : > { %p2459_p7 = scmp.ge.s32.totalorder %s3174_s27, 1  ;;  %p204_p8 = scmp.lt.s32.totalorder %s3174_s27, 3 }
   0xc   : > { %s3666_s11 = scalar_select %p3261_p5, 1, 0 }
   0xd   : > { %s3667_s12 = scalar_select %p3265_p6, 1, 0 }
   0xe   : > { %p3663_p9 = scmp.eq.s32.totalorder %s3244_s28, 0  ;;  %p3272_p10 = pnand %p2459_p7, %p204_p8 }
   0xf   : > { %s3176_s14 = smov [#allocation2]   ;;  %s3080_s19 = scalar_lea.hbm %s3657_s2, 6144 }
  0x10   : > { %s3668_s13 = scalar_select %p3272_p10, 1, 0 }
  0x11   : > { %s219_s15 = sshll.u32 %s3176_s14, 4  ;;  %p3011_p11 = pneg %p3272_p10  ;;  %s220_s15 = int_to_ptr.vmem [resolvable:$true] %s219_s15 }
  0x12   : > { %p3081_p13 = scmp.ne.s32.totalorder %s3657_s2, %s3080_s19  ;;  %p3087_p3 = scmp.lt.u32.totalorder %s3080_s19, %s3657_s2 }
  0x13   : > { %p3280_p12 = pnand %p3663_p9, %p3011_p11 }
  0x15   : > { %p3082_p0 = pneg %p3280_p12 }
  0x17   : > { %p3083_p1 = pnand %p3082_p0, %p3081_p13 }
  0x19   : > { %p3084_p2 = pneg %p3083_p1 }
  0x1b   : > { %p3089_p4 = pnand %p3087_p3, %p3084_p2 }
  0x1d   : > { %3092 = shalt.err (!%p3089_p4)
}
  0x1e   : > { %s3093_s29 = scalar_lea.vmem %s220_s15, 6144  ;;  %p3101_p9 = scmp.lt.s32.totalorder %s220_s15, %s220_s15 }
  0x1f   : > { %p3094_p7 = scmp.ne.s32.totalorder %s220_s15, %s3093_s29  ;;  %p3102_p6 = scmp.lt.s32.totalorder %s3093_s29, %s3093_s29 }
  0x21   : > { %p3096_p8 = pnand %p3094_p7, %p3082_p0  ;;  %p3103_p5 = por %p3102_p6, %p3101_p9 }
  0x23   : > { %p3097_p11 = pneg %p3096_p8 }
  0x25   : > { %p3104_p10 = pnand %p3103_p5, %p3097_p11 }
  0x27   : > { %3107 = shalt.err (!%p3104_p10)
}
  0x28   : > { %s3177_s8 = smov 128   ;;  %s3178_s9 = smov 8  }
  0x29   : > { %3014 = dma.hbm_to_vmem [thread:$0]  (!%p3280_p12), %s3657_s2, 6144, %s220_s15, [#allocation3], %s3177_s8, %s3177_s8, %s3178_s9  }
  0x2a   : > { %p3670_p13 = scmp.ne.s32.totalorder %s3668_s13, 0 }
  0x2b   : > { %p3671_p1 = scmp.eq.s32.totalorder (!%p3670_p13), %s3244_s28, 0 }
  0x2c   : > { %254 = sbr.rel (%p3670_p13) target bundleno = 2348 (0x92c), region = 48 }
  0x33   : > { %3153 = dma.done.wait (%p3671_p1), [#allocation3], 6144   ;;  %p3672_p0 = pmov %p3671_p1 }
  0x34   : > { %p285_p5 = scmp.lt.s32.totalorder %s3244_s28, 1  ;;  %v3179_v0 = vmov 0.0|0.0   ;;  %vm3180_vm0 = vmmov 0   ;;  %v3181_v1 = vmov 0.0   ;;  %v291_v2 = vld [vmem:[#allocation2] sm:$0xff]  ;;  %v292_v3 = vld [vmem:[#allocation2 + $0x8] sm:$0xff] }
  0x35   : > { %3155 = vsyncadd (%p3672_p0), [#allocation3], 4294961152  ;;  %2879 = vmatprep.subr.bf16.mxu0 %v3179_v0  ;;  %2897 = vmatprep.subr.bf16.mxu1 %v3179_v0  ;;  %v303_v4 = vld [vmem:[#allocation2 + $0x60] sm:$0xff]  ;;  %v2880_v5 = vpack.c.bf16 %v292_v3, %v291_v2  ;;  %v304_v6 = vld [vmem:[#allocation2 + $0x68] sm:$0xff]  ;;  %vm339_vm1 = vcmask 261120   ;;  %vm1499_vm3 = vcmask 64512  }
  0x36   : > { %2625 = vmatprep.mubr.msk.f32.mxu0 %vm3180_vm0, %v3181_v1  ;;  %2658 = vmatprep.mubr.msk.f32.mxu1 %vm3180_vm0, %v3181_v1  ;;  %s286_s13 = scalar_select %p285_p5, %s3244_s28, 1  ;;  %v293_v7 = vld [vmem:[#allocation2 + $0x10] sm:$0xff]  ;;  %v294_v8 = vld [vmem:[#allocation2 + $0x18] sm:$0xff]  ;;  %v2898_v9 = vpack.c.bf16 %v304_v6, %v303_v4  ;;  %v295_v14 = vld [vmem:[#allocation2 + $0x20] sm:$0xff] }
  0x37   : > { %v305_v10 = vld [vmem:[#allocation2 + $0x70] sm:$0xff]  ;;  %v306_v11 = vld [vmem:[#allocation2 + $0x78] sm:$0xff]  ;;  %2881 = vmatpush3.bf16.msra.mxu0 %v2880_v5  ;;  %v2883_v12 = vpack.c.bf16 %v294_v8, %v293_v7  ;;  %v296_v15 = vld [vmem:[#allocation2 + $0x28] sm:$0xff]  ;;  %s282_s9 = sand.u32 1, %s3166_s25   ;;  %s2496_s17 = sshll.u32 %s3244_s28, 7 }
  0x38   : > { %s2465_s15 = sshll.u32 %s286_s13, 3  ;;  %2899 = vmatpush3.bf16.msra.mxu1 %v2898_v9  ;;  %2882 = vmatprep.subr.bf16.mxu0 %v3179_v0  ;;  %v2901_v13 = vpack.c.bf16 %v306_v11, %v305_v10  ;;  %v311_v16 = vld [vmem:[#allocation2 + $0xa0] sm:$0xff]  ;;  %v312_v17 = vld [vmem:[#allocation2 + $0xa8] sm:$0xff]  ;;  %v2886_v19 = vpack.c.bf16 %v296_v15, %v295_v14  ;;  %v297_v21 = vld [vmem:[#allocation2 + $0x30] sm:$0xff]  ;;  %s2464_s14 = sshll.u32 %s282_s9, 3 }
  0x39   : > { %s288_s19 = scalar_lea.vmem %s3655_s0, %s2465_s15  ;;  %2900 = vmatprep.subr.bf16.mxu1 %v3179_v0  ;;  %v2910_v20 = vpack.c.bf16 %v312_v17, %v311_v16  ;;  %v298_v22 = vld [vmem:[#allocation2 + $0x38] sm:$0xff]  ;;  %v313_v23 = vld [vmem:[#allocation2 + $0xb0] sm:$0xff]  ;;  %v299_v27 = vld [vmem:[#allocation2 + $0x40] sm:$0xff]  ;;  %s284_s13 = scalar_lea.vmem [#allocation5], %s2464_s14 }
  0x3a   : > { %v3319_v18 = vld [vmem:[%s288_s19] sm:$0xff]  ;;  %v314_v24 = vld [vmem:[#allocation2 + $0xb8] sm:$0xff]  ;;  %v2889_v25 = vpack.c.bf16 %v298_v22, %v297_v21  ;;  %v300_v28 = vld [vmem:[#allocation2 + $0x48] sm:$0xff]  ;;  %s2387_s15 = sshll.u32 %s284_s13, 4  ;;  %s3612_s19 = scalar_lea.hbm %s3662_s7, %s2496_s17  ;;  %s3614_s15 = int_to_ptr.vmem [resolvable:$true] %s2387_s15 }
  0x3b   : > { %2884 = vmatpush3.bf16.msra.mxu0 %v2883_v12  ;;  %v2913_v26 = vpack.c.bf16 %v314_v24, %v313_v23  ;;  %v319_v29 = vld [vmem:[#allocation2 + $0xe0] sm:$0xff]  ;;  %v320_v30 = vld [vmem:[#allocation2 + $0xe8] sm:$0xff]  ;;  %v2892_v31 = vpack.c.bf16 %v300_v28, %v299_v27  ;;  %v301_v33 = vld [vmem:[#allocation2 + $0x50] sm:$0xff]  ;;  %s2374_s20 = scalar_lea.sflag [#allocation4], %s282_s9  ;;  %s3108_s21 = scalar_lea.vmem %s3614_s15, 128 }
  0x3c   : > { %2902 = vmatpush3.bf16.msra.mxu1 %v2901_v13  ;;  %2885 = vmatprep.subr.bf16.mxu0 %v3179_v0  ;;  %v2922_v32 = vpack.c.bf16 %v320_v30, %v319_v29  ;;  %v302_v34 = vld [vmem:[#allocation2 + $0x58] sm:$0xff]  ;;  %v321_v35 = vld [vmem:[#allocation2 + $0xf0] sm:$0xff]  ;;  %v307_v39 = vld [vmem:[#allocation2 + $0x80] sm:$0xff]  ;;  %p3109_p6 = scmp.ne.s32.totalorder %s3614_s15, %s3108_s21  ;;  %p3673_p9 = scmp.ne.s32.totalorder %s3666_s11, 0 }
  0x3d   : > { %2909 = vmatprep.subr.bf16.mxu1 %v3179_v0  ;;  %v322_v36 = vld [vmem:[#allocation2 + $0xf8] sm:$0xff]  ;;  %v2895_v37 = vpack.c.bf16 %v302_v34, %v301_v33  ;;  %v308_v40 = vld [vmem:[#allocation2 + $0x88] sm:$0xff]  ;;  %v327_v41 = vld [vmem:[#allocation2 + $0x120] sm:$0xff]  ;;  %s3182_s28 = smov [#allocation5]  }
  0x3e   : > { %2626 = vmatmul.mubr.msk.f32.vlgmr.msra.gmra.mrb[0].mxu0 %vm339_vm1, %v3319_v18  ;;  %v2925_v38 = vpack.c.bf16 %v322_v36, %v321_v35  ;;  %v328_v42 = vld [vmem:[#allocation2 + $0x128] sm:$0xff]  ;;  %v2904_v43 = vpack.c.bf16 %v308_v40, %v307_v39  ;;  %v309_v44 = vld [vmem:[#allocation2 + $0x90] sm:$0xff]  ;;  %v310_v45 = vld [vmem:[#allocation2 + $0x98] sm:$0xff]  ;;  %p3110_p10 = pnand %p3109_p6, %p3673_p9  ;;  %s3112_s22 = sshll.u32 %s3182_s28, 4  ;;  %s3113_s22 = int_to_ptr.vmem [resolvable:$false] %s3112_s22 }
  0x3f   : > { %2887 = vmatpush3.bf16.msra.mxu0 %v2886_v19  ;;  %2659 = vmatmul.mubr.msk.f32.vlgmr.msra.gmra.mrb[0].mxu1 %vm339_vm1, %v3319_v18  ;;  %v2934_v46 = vpack.c.bf16 %v328_v42, %v327_v41  ;;  %v2907_v47 = vpack.c.bf16 %v310_v45, %v309_v44  ;;  %v315_v48 = vld [vmem:[#allocation2 + $0xc0] sm:$0xff]  ;;  %v316_v49 = vld [vmem:[#allocation2 + $0xc8] sm:$0xff]  ;;  %v317_v51 = vld [vmem:[#allocation2 + $0xd0] sm:$0xff]  ;;  %s3114_s23 = scalar_lea.vmem %s3113_s22, 256  ;;  %p3115_p2 = scmp.lt.s32.totalorder %s3614_s15, %s3113_s22 }
  0x40   : > { %2911 = vmatpush3.bf16.msra.mxu1 %v2910_v20  ;;  %2888 = vmatprep.subr.bf16.mxu0 %v3179_v0  ;;  %v2916_v50 = vpack.c.bf16 %v316_v49, %v315_v48  ;;  %v318_v52 = vld [vmem:[#allocation2 + $0xd8] sm:$0xff]  ;;  %v329_v54 = vld [vmem:[#allocation2 + $0x130] sm:$0xff]  ;;  %v323_v57 = vld [vmem:[#allocation2 + $0x100] sm:$0xff]  ;;  %p3111_p12 = pneg %p3110_p10  ;;  %p3116_p3 = scmp.lt.s32.totalorder %s3114_s23, %s3108_s21 }
  0x41   : > { %2912 = vmatprep.subr.bf16.mxu1 %v3179_v0  ;;  %2636 = vmatprep.mubr.msk.f32.mxu0 %vm3180_vm0, %v3181_v1  ;;  %v2919_v53 = vpack.c.bf16 %v318_v52, %v317_v51  ;;  %v330_v55 = vld [vmem:[#allocation2 + $0x138] sm:$0xff]  ;;  %v324_v58 = vld [vmem:[#allocation2 + $0x108] sm:$0xff]  ;;  %v335_v59 = vld [vmem:[#allocation2 + $0x160] sm:$0xff] }
  0x42   : > { %2680 = vmatprep.mubr.msk.f32.mxu1 %vm3180_vm0, %v3181_v1  ;;  %v2937_v56 = vpack.c.bf16 %v330_v55, %v329_v54  ;;  %v2928_v60 = vpack.c.bf16 %v324_v58, %v323_v57  ;;  %v336_v61 = vld [vmem:[#allocation2 + $0x168] sm:$0xff]  ;;  %v325_v63 = vld [vmem:[#allocation2 + $0x110] sm:$0xff]  ;;  %v326_v2 = vld [vmem:[#allocation2 + $0x118] sm:$0xff]  ;;  %p3117_p4 = por %p3116_p3, %p3115_p2 }
  0x43   : > { %2890 = vmatpush3.bf16.msra.mxu0 %v2889_v25  ;;  %v2946_v62 = vpack.c.bf16 %v336_v61, %v335_v59  ;;  %v2931_v3 = vpack.c.bf16 %v326_v2, %v325_v63  ;;  %v337_v4 = vld [vmem:[#allocation2 + $0x170] sm:$0xff]  ;;  %v338_v5 = vld [vmem:[#allocation2 + $0x178] sm:$0xff]  ;;  %v331_v7 = vld [vmem:[#allocation2 + $0x140] sm:$0xff] }
  0x44   : > { %2914 = vmatpush3.bf16.msra.mxu1 %v2913_v26  ;;  %2891 = vmatprep.subr.bf16.mxu0 %v3179_v0  ;;  %v2949_v6 = vpack.c.bf16 %v338_v5, %v337_v4  ;;  %v332_v8 = vld [vmem:[#allocation2 + $0x148] sm:$0xff]  ;;  %v333_v10 = vld [vmem:[#allocation2 + $0x150] sm:$0xff]  ;;  %v334_v11 = vld [vmem:[#allocation2 + $0x158] sm:$0xff]  ;;  %p3118_p7 = pnand %p3117_p4, %p3111_p12 }
  0x45   : > { %2921 = vmatprep.subr.bf16.mxu1 %v3179_v0  ;;  %v2940_v9 = vpack.c.bf16 %v332_v8, %v331_v7  ;;  %v2943_v12 = vpack.c.bf16 %v334_v11, %v333_v10  ;;  %v1491_v42 = vld [vmem:[%s3656_s1] sm:$0xff] }
  0x46   : > { %2637 = vmatmul.mubr.msk.f32.vlgmr.msra.gmra.mrb[2].mxu0 %vm339_vm1, %v3319_v18  ;;  %vm1492_vm2 = vcmp.eq.f32.partialorder %v1491_v42, 0.0  ;;  %v1844_v42 = vld [vmem:[%s3658_s3 + $0x40] sm:$0xff] }
  0x47   : > { %2893 = vmatpush3.bf16.msra.mxu0 %v2892_v31  ;;  %2681 = vmatmul.mubr.msk.f32.vlgmr.msra.gmra.mrb[2].mxu1 %vm339_vm1, %v3319_v18 }
  0x48   : > { %2923 = vmatpush3.bf16.msra.mxu1 %v2922_v32  ;;  %2894 = vmatprep.subr.bf16.mxu0 %v3179_v0 }
  0x49   : > { %2924 = vmatprep.subr.bf16.mxu1 %v3179_v0  ;;  %2647 = vmatprep.mubr.msk.f32.mxu0 %vm3180_vm0, %v3181_v1 }
  0x4a   : > { %2702 = vmatprep.mubr.msk.f32.mxu1 %vm3180_vm0, %v3181_v1 }
  0x4b   : > { %2896 = vmatpush3.bf16.msra.mxu0 %v2895_v37 }
  0x4c   : > { %2926 = vmatpush3.bf16.msra.mxu1 %v2925_v38  ;;  %2903 = vmatprep.subr.bf16.mxu0 %v3179_v0 }
  0x4d   : > { %2933 = vmatprep.subr.bf16.mxu1 %v3179_v0 }
  0x4e   : > { %2648 = vmatmul.mubr.msk.f32.vlgmr.msra.gmra.mrb[4].mxu0 %vm339_vm1, %v3319_v18 }
  0x4f   : > { %2905 = vmatpush3.bf16.msra.mxu0 %v2904_v43  ;;  %2703 = vmatmul.mubr.msk.f32.vlgmr.msra.gmra.mrb[4].mxu1 %vm339_vm1, %v3319_v18 }
  0x50   : > { %2906 = vmatprep.subr.bf16.mxu0 %v3179_v0  ;;  %2669 = vmatprep.mubr.msk.f32.mxu0 %vm3180_vm0, %v3181_v1 }
  0x51   : > { %2935 = vmatpush3.bf16.msra.mxu1 %v2934_v46  ;;  %2724 = vmatprep.mubr.msk.f32.mxu1 %vm3180_vm0, %v3181_v1 }
  0x52   : > { %2936 = vmatprep.subr.bf16.mxu1 %v3179_v0 }
  0x53   : > { %2908 = vmatpush3.bf16.msra.mxu0 %v2907_v47 }
  0x54   : > { %2915 = vmatprep.subr.bf16.mxu0 %v3179_v0 }
  0x55   : > { %2938 = vmatpush3.bf16.msra.mxu1 %v2937_v56 }
  0x56   : > { %2670 = vmatmul.mubr.msk.f32.vlgmr.msra.gmra.mrb[6].mxu0 %vm339_vm1, %v3319_v18  ;;  %2945 = vmatprep.subr.bf16.mxu1 %v3179_v0 }
  0x57   : > { %2917 = vmatpush3.bf16.msra.mxu0 %v2916_v50  ;;  %2691 = vmatprep.mubr.msk.f32.mxu0 %vm3180_vm0, %v3181_v1 }
  0x58   : > { %2918 = vmatprep.subr.bf16.mxu0 %v3179_v0  ;;  %2725 = vmatmul.mubr.msk.f32.vlgmr.msra.gmra.mrb[6].mxu1 %vm339_vm1, %v3319_v18 }
  0x59   : > { %2947 = vmatpush3.bf16.msra.mxu1 %v2946_v62  ;;  %2746 = vmatprep.mubr.msk.f32.mxu1 %vm3180_vm0, %v3181_v1 }
  0x5a   : > { %2948 = vmatprep.subr.bf16.mxu1 %v3179_v0 }
  0x5b   : > { %2920 = vmatpush3.bf16.msra.mxu0 %v2919_v53 }
  0x5c   : > { %2927 = vmatprep.subr.bf16.mxu0 %v3179_v0 }
  0x5d   : > { %2950 = vmatpush3.bf16.msra.mxu1 %v2949_v6 }
  0x5e   : > { %2692 = vmatmul.mubr.msk.f32.vlgmr.msra.gmra.mrb[8].mxu0 %vm339_vm1, %v3319_v18  ;;  %2764 = vmatprep.subr.mxu1 %v3181_v1 }
  0x5f   : > { %2713 = vmatprep.mubr.msk.f32.mxu0 %vm3180_vm0, %v3181_v1  ;;  %2929 = vmatpush3.bf16.msra.mxu0 %v2928_v60 }
  0x60   : > { %2930 = vmatprep.subr.bf16.mxu0 %v3179_v0  ;;  %2747 = vmatmul.mubr.msk.f32.vlgmr.msra.gmra.mrb[8].mxu1 %vm339_vm1, %v3319_v18 }
  0x61   : > { %2766 = vmatprep.mubr.msk.f32.mxu1 %vm3180_vm0, %v3181_v1 }
  0x63   : > { %2932 = vmatpush3.bf16.msra.mxu0 %v2931_v3 }
  0x64   : > { %2939 = vmatprep.subr.bf16.mxu0 %v3179_v0 }
  0x66   : > { %2714 = vmatmul.mubr.msk.f32.vlgmr.msra.gmra.mrb[10].mxu0 %vm339_vm1, %v3319_v18 }
  0x67   : > { %2941 = vmatpush3.bf16.msra.mxu0 %v2940_v9  ;;  %2735 = vmatprep.mubr.msk.f32.mxu0 %vm3180_vm0, %v3181_v1 }
  0x68   : > { %2942 = vmatprep.subr.bf16.mxu0 %v3179_v0 }
  0x6b   : > { %2944 = vmatpush3.bf16.msra.mxu0 %v2943_v12 }
  0x6c   : > { %2749 = vmatprep.subr.mxu0 %v3181_v1 }
  0x6e   : > { %2736 = vmatmul.mubr.msk.f32.vlgmr.msra.gmra.mrb[12].mxu0 %vm339_vm1, %v3319_v18 }
  0x6f   : > { %2751 = vmatprep.mubr.msk.f32.mxu0 %vm3180_vm0, %v3181_v1 }
 0x111   : > { %v409_v13 = vpop.f32.mrb[0].mxu0 }
 0x112   : > { %v2627_v14 = vpop.f32.mrb[1].mxu0  ;;  %v619_v15 = vpop.f32.mrb[0].mxu1 }
 0x113   : > { %v2660_v16 = vpop.f32.mrb[1].mxu1 }
 0x119   : > { %v479_v17 = vpop.f32.mrb[2].mxu0 }
 0x11a   : > { %v2638_v19 = vpop.f32.mrb[3].mxu0  ;;  %v759_v20 = vpop.f32.mrb[2].mxu1 }
 0x11b   : > { %v2682_v21 = vpop.f32.mrb[3].mxu1 }
 0x121   : > { %v549_v22 = vpop.f32.mrb[4].mxu0 }
 0x122   : > { %v2649_v23 = vpop.f32.mrb[5].mxu0  ;;  %v899_v24 = vpop.f32.mrb[4].mxu1 }
 0x123   : > { %2765 = vmatpush3.xpose.msk.msra.mxu1 %vm339_vm1, %v899_v24  ;;  %v2704_v25 = vpop.f32.mrb[5].mxu1 }
 0x124   : > { %2774 = vmatprep.subr.mxu1 %v3181_v1  ;;  %v1840_v25 = vld [vmem:[%s3658_s3 + $0x20] sm:$0xff] }
 0x126   : > { %2767 = vmatmul.mubr.msk.f32.vlgmr.msra.gmra.mrb[10].mxu1 %vm339_vm1, %v619_v15 }
 0x127   : > { %2776 = vmatprep.mubr.msk.f32.mxu1 %vm3180_vm0, %v3181_v1 }
 0x129   : > { %v689_v26 = vpop.f32.mrb[6].mxu0 }
 0x12a   : > { %v2671_v27 = vpop.f32.mrb[7].mxu0  ;;  %2750 = vmatpush3.xpose.msk.msra.mxu0 %vm339_vm1, %v689_v26 }
 0x12b   : > { %2754 = vmatprep.subr.mxu0 %v3181_v1  ;;  %v1039_v30 = vpop.f32.mrb[6].mxu1  ;;  %v1841_v27 = vld [vmem:[%s3658_s3 + $0x28] sm:$0xff] }
 0x12c   : > { %v2726_v31 = vpop.f32.mrb[7].mxu1  ;;  %2775 = vmatpush3.msra.mxu1 %v1039_v30 }
 0x12d   : > { %2752 = vmatmul.mubr.msk.f32.vlgmr.msra.gmra.mrb[14].mxu0 %vm339_vm1, %v409_v13  ;;  %2784 = vmatprep.subr.mxu1 %v3181_v1 }
 0x12e   : > { %2755 = vmatpush3.xpose.msk.msra.mxu0 %vm339_vm1, %v759_v20  ;;  %2756 = vmatprep.mubr.msk.f32.mxu0 %vm3180_vm0, %v3181_v1 }
 0x12f   : > { %2759 = vmatprep.subr.mxu0 %v3181_v1 }
 0x131   : > { %v829_v28 = vpop.f32.mrb[8].mxu0  ;;  %2757 = vmatmul.mubr.msk.f32.vlgmr.msra.gmra.mrb[16].mxu0 %vm339_vm1, %v479_v17 }
 0x132   : > { %2760 = vmatpush3.xpose.msk.msra.mxu0 %vm339_vm1, %v829_v28  ;;  %v2693_v29 = vpop.f32.mrb[9].mxu0  ;;  %2761 = vmatprep.mubr.msk.f32.mxu0 %vm3180_vm0, %v3181_v1  ;;  %v1836_v28 = vld [vmem:[%s3658_s3] sm:$0xff] }
 0x133   : > { %2769 = vmatprep.subr.mxu0 %v3181_v1  ;;  %v3412_v34 = vpop.f32.mrb[8].mxu1  ;;  %v1837_v29 = vld [vmem:[%s3658_s3 + $0x8] sm:$0xff] }
 0x134   : > { %v2748_v35 = vpop.f32.mrb[9].mxu1 }
 0x135   : > { %2762 = vmatmul.mubr.msk.f32.vlgmr.msra.gmra.mrb[18].mxu0 %vm339_vm1, %v549_v22 }
 0x136   : > { %2771 = vmatprep.mubr.msk.f32.mxu0 %vm3180_vm0, %v3181_v1 }
 0x139   : > { %v969_v32 = vpop.f32.mrb[10].mxu0 }
 0x13a   : > { %v2715_v33 = vpop.f32.mrb[11].mxu0  ;;  %2770 = vmatpush3.msra.mxu0 %v969_v32  ;;  %v2952_v32 = vpack.c.bf16 %v1841_v27, %v1840_v25  ;;  %v2177_v25 = vld [vmem:[%s3659_s4 + $0x8] sm:$0xff]  ;;  %v2179_v27 = vld [vmem:[%s3659_s4 + $0x18] sm:$0xff] }
 0x13b   : > { %2779 = vmatprep.subr.mxu0 %v3181_v1  ;;  %v2958_v33 = vpack.c.bf16 %v1837_v29, %v1836_v28  ;;  %v2258_v29 = vld [vmem:[%s3660_s5] sm:$0xff] }
 0x141   : > { %v3415_v36 = vpop.f32.mrb[12].mxu0 }
 0x142   : > { %v2737_v37 = vpop.f32.mrb[13].mxu0 }
 0x143   : > { %v1842_v37 = vld [vmem:[%s3658_s3 + $0x30] sm:$0xff] }
 0x1f9   : > { %v1483_v38 = vpop.f32.mrb[10].mxu1 }
 0x1fa   : > { %v2768_v39 = vpop.f32.mrb[11].mxu1  ;;  %v1490_v48 = vmul.f32 0.17677669, %v1483_v38  ;;  %v1843_v38 = vld [vmem:[%s3658_s3 + $0x38] sm:$0xff] }
 0x1fb   : > { %v1838_v39 = vld [vmem:[%s3658_s3 + $0x10] sm:$0xff] }
 0x1fc   : > { %v1498_v57 = vsel %vm1492_vm2, -1e+09, %v1490_v48  ;;  %v1847_v48 = vld [vmem:[%s3658_s3 + $0x58] sm:$0xff] }
 0x1fd   : > { %v1509_v58 = vsel %vm1499_vm3, %v1498_v57, -inf }
 0x200   : > { %v1255_v40 = vpop.f32.mrb[14].mxu0 }
 0x201   : > { %v2753_v41 = vpop.f32.mrb[15].mxu0  ;;  %v1487_v44 = vmul.f32 0.17677669, %v1255_v40  ;;  %v1839_v40 = vld [vmem:[%s3658_s3 + $0x18] sm:$0xff] }
 0x202   : > { %v2961_v41 = vpack.c.bf16 %v1839_v40, %v1838_v39  ;;  %v2265_v39 = vld [vmem:[%s3660_s5 + $0x38] sm:$0xff] }
 0x203   : > { %v1495_v53 = vsel %vm1492_vm2, -1e+09, %v1487_v44 }
 0x204   : > { %v1331_v43 = vpop.f32.mrb[16].mxu0  ;;  %v1500_v55 = vsel %vm1499_vm3, %v1495_v53, -inf }
 0x205   : > { %v1488_v45 = vmul.f32 0.17677669, %v1331_v43  ;;  %v2758_v46 = vpop.f32.mrb[17].mxu0  ;;  %v1845_v43 = vld [vmem:[%s3658_s3 + $0x48] sm:$0xff] }
 0x206   : > { %v2964_v44 = vpack.c.bf16 %v1845_v43, %v1844_v42  ;;  %v1849_v46 = vld [vmem:[%s3658_s3 + $0x68] sm:$0xff] }
 0x207   : > { %v1496_v47 = vsel %vm1492_vm2, -1e+09, %v1488_v45  ;;  %v1848_v45 = vld [vmem:[%s3658_s3 + $0x60] sm:$0xff]  ;;  %v2267_v42 = vld [vmem:[%s3660_s5 + $0x48] sm:$0xff] }
 0x208   : > { %v1407_v49 = vpop.f32.mrb[18].mxu0  ;;  %v1503_v50 = vsel %vm1499_vm3, %v1496_v47, -inf }
 0x209   : > { %v1489_v51 = vmul.f32 0.17677669, %v1407_v49  ;;  %1504 = vmax.xlane.f32.xlu0 %v1503_v50  ;;  %v2763_v52 = vpop.f32.mrb[19].mxu0 }
 0x20b   : > { %v1497_v54 = vsel %vm1492_vm2, -1e+09, %v1489_v51  ;;  %v2970_v51 = vpack.c.bf16 %v1849_v46, %v1848_v45  ;;  %v2269_v45 = vld [vmem:[%s3660_s5 + $0x58] sm:$0xff] }
 0x20c   : > { %v1506_v56 = vsel %vm1499_vm3, %v1497_v54, -inf }
 0x20d   : > { %1501 = vmax.xlane.f32.xlu0 %v1500_v55  ;;  %1507 = vmax.xlane.f32.xlu1 %v1506_v56 }
 0x211   : > { %1510 = vmax.xlane.f32.xlu1 %v1509_v58 }
 0x296   : > { %v1505_v59 = vpop.xlane.xlu0 %1504 }
 0x297   : > { %v1513_v60 = vsub.f32 %v1496_v47, %v1505_v59  ;;  %v1846_v47 = vld [vmem:[%s3658_s3 + $0x50] sm:$0xff] }
 0x298   : > { %v2967_v52 = vpack.c.bf16 %v1847_v48, %v1846_v47  ;;  %v2270_v47 = vld [vmem:[%s3660_s5 + $0x60] sm:$0xff]  ;;  %v2271_v48 = vld [vmem:[%s3660_s5 + $0x68] sm:$0xff] }
 0x299   : > { %v1518_v61 = vmul.f32 1.442695, %v1513_v60 }
 0x29a   : > { %v1502_v62 = vpop.xlane.xlu0 %1501  ;;  %v1508_v63 = vpop.xlane.xlu1 %1507 }
 0x29b   : > { %3060 = vpow2.f32 %v1518_v61  ;;  %v1512_v2 = vsub.f32 %v1495_v53, %v1502_v62  ;;  %v1514_v3 = vsub.f32 %v1497_v54, %v1508_v63  ;;  %v1850_v53 = vld [vmem:[%s3658_s3 + $0x70] sm:$0xff]  ;;  %v1851_v54 = vld [vmem:[%s3658_s3 + $0x78] sm:$0xff]  ;;  %v2146_v62 = vlaneseq }
 0x29d   : > { %v1516_v4 = vmul.f32 1.442695, %v1512_v2  ;;  %v1520_v5 = vmul.f32 1.442695, %v1514_v3  ;;  %v3512_v3 = vshrl.u32 %v2146_v62, 7 }
 0x29e   : > { %v1511_v6 = vpop.xlane.xlu1 %1510 }
 0x29f   : > { %3062 = vpow2.f32 %v1516_v4  ;;  %v1515_v7 = vsub.f32 %v1498_v57, %v1511_v6  ;;  %v2973_v57 = vpack.c.bf16 %v1851_v54, %v1850_v53  ;;  %v2168_v53 = vsub.s32 1, %v3512_v3 }
 0x2a0   : > { %3064 = vpow2.f32 %v1520_v5  ;;  %v2173_v54 = vsub.s32 2, %v3512_v3 }
 0x2a1   : > { %v1522_v8 = vmul.f32 1.442695, %v1515_v7  ;;  %v2148_v7 = vsub.s32 0, %v3512_v3 }
 0x2a3   : > { %3066 = vpow2.f32 %v1522_v8 }
 0x2a5   : > { %v3061_v9 = vpop.eup %3060 }
 0x2a6   : > { %v1527_v10 = vsel %vm1499_vm3, %v3061_v9, 0.0 }
 0x2a7   : > { %1528 = vadd.xlane.f32.xlu0 %v1527_v10 }
 0x2a9   : > { %v3063_v11 = vpop.eup %3062 }
 0x2aa   : > { %v3065_v12 = vpop.eup %3064  ;;  %v1524_v13 = vsel %vm1499_vm3, %v3063_v11, 0.0 }
 0x2ab   : > { %1525 = vadd.xlane.f32.xlu1 %v1524_v13  ;;  %v1530_v14 = vsel %vm1499_vm3, %v3065_v12, 0.0 }
 0x2ac   : > { %1531 = vadd.xlane.f32.xlu0 %v1530_v14 }
 0x2ad   : > { %v3067_v15 = vpop.eup %3066 }
 0x2ae   : > { %v1533_v16 = vsel %vm1499_vm3, %v3067_v15, 0.0 }
 0x2af   : > { %1534 = vadd.xlane.f32.xlu1 %v1533_v16 }
 0x334   : > { %v1529_v17 = vpop.xlane.xlu0 %1528 }
 0x335   : > { %3068 = vrcp.f32 %v1529_v17 }
 0x338   : > { %v1526_v19 = vpop.xlane.xlu1 %1525 }
 0x339   : > { %v1532_v20 = vpop.xlane.xlu0 %1531  ;;  %3070 = vrcp.f32 %v1526_v19 }
 0x33a   : > { %3072 = vrcp.f32 %v1532_v20 }
 0x33c   : > { %v1535_v21 = vpop.xlane.xlu1 %1534 }
 0x33d   : > { %3074 = vrcp.f32 %v1535_v21 }
 0x33f   : > { %v3069_v22 = vpop.eup %3068 }
 0x340   : > { %v1541_v23 = vmul.f32 %v3069_v22, %v3061_v9  ;;  %v3518_v9 = vld [vmem:[%s3661_s6] sm:$0xff] }
 0x342   : > { %2777 = vmatmul.mubr.msk.f32.vlgmr.msra.gmra.mrb[12].mxu1 %vm1499_vm3, %v1541_v23 }
 0x343   : > { %v3071_v24 = vpop.eup %3070  ;;  %2785 = vmatpush3.msra.mxu1 %v3412_v34  ;;  %2786 = vmatprep.mubr.msk.f32.mxu1 %vm3180_vm0, %v3181_v1 }
 0x344   : > { %v1540_v26 = vmul.f32 %v3071_v24, %v3063_v11  ;;  %2957 = vmatprep.subr.bf16.mxu1 %v3179_v0  ;;  %v3073_v30 = vpop.eup %3072  ;;  %v2176_v24 = vld [vmem:[%s3659_s4] sm:$0xff] }
 0x345   : > { %v1542_v34 = vmul.f32 %v3073_v30, %v3065_v12  ;;  %v2259_v30 = vld [vmem:[%s3660_s5 + $0x8] sm:$0xff] }
 0x346   : > { %2772 = vmatmul.mubr.msk.f32.vlgmr.msra.gmra.mrb[20].mxu0 %vm1499_vm3, %v1540_v26  ;;  %v2976_v26 = vpack.c.bf16 %v2177_v25, %v2176_v24  ;;  %v2364_v24 = vsub.s32 5, %v3512_v3  ;;  %v2369_v25 = vsub.s32 6, %v3512_v3 }
 0x347   : > { %v3075_v31 = vpop.eup %3074  ;;  %2780 = vmatpush3.msra.mxu0 %v3415_v36  ;;  %2781 = vmatprep.mubr.msk.f32.mxu0 %vm3180_vm0, %v3181_v1  ;;  %v2955_v36 = vpack.c.bf16 %v1843_v38, %v1842_v37  ;;  %v2263_v37 = vld [vmem:[%s3660_s5 + $0x28] sm:$0xff] }
 0x348   : > { %v1543_v35 = vmul.f32 %v3075_v31, %v3067_v15  ;;  %2951 = vmatprep.subr.bf16.mxu0 %v3179_v0  ;;  %v2260_v31 = vld [vmem:[%s3660_s5 + $0x10] sm:$0xff] }
 0x34a   : > { %2782 = vmatmul.mubr.msk.f32.vlgmr.msra.gmra.mrb[22].mxu0 %vm1499_vm3, %v1542_v34  ;;  %2787 = vmatmul.mubr.msk.f32.vlgmr.msra.gmra.mrb[14].mxu1 %vm1499_vm3, %v1543_v35  ;;  %v2262_v35 = vld [vmem:[%s3660_s5 + $0x20] sm:$0xff] }
 0x34b   : > { %2953 = vmatpush3.bf16.msra.mxu0 %v2952_v32  ;;  %2959 = vmatpush3.bf16.msra.mxu1 %v2958_v33  ;;  %v2982_v32 = vpack.c.bf16 %v2259_v30, %v2258_v29  ;;  %v2261_v33 = vld [vmem:[%s3660_s5 + $0x18] sm:$0xff]  ;;  %v2988_v38 = vpack.c.bf16 %v2263_v37, %v2262_v35 }
 0x34c   : > { %2954 = vmatprep.subr.bf16.mxu0 %v3179_v0  ;;  %2797 = vmatprep.mubr.msk.f32.mxu0 %vm3180_vm0, %v3181_v1  ;;  %v2985_v34 = vpack.c.bf16 %v2261_v33, %v2260_v31 }
 0x34d   : > { %2960 = vmatprep.subr.bf16.mxu1 %v3179_v0  ;;  %2808 = vmatprep.mubr.msk.f32.mxu1 %vm3180_vm0, %v3181_v1 }
 0x34f   : > { %2956 = vmatpush3.bf16.msra.mxu0 %v2955_v36  ;;  %2962 = vmatpush3.bf16.msra.mxu1 %v2961_v41  ;;  %v2264_v36 = vld [vmem:[%s3660_s5 + $0x30] sm:$0xff]  ;;  %v2266_v41 = vld [vmem:[%s3660_s5 + $0x40] sm:$0xff] }
 0x350   : > { %2963 = vmatprep.subr.bf16.mxu0 %v3179_v0  ;;  %2969 = vmatprep.subr.bf16.mxu1 %v3179_v0  ;;  %v2991_v40 = vpack.c.bf16 %v2265_v39, %v2264_v36  ;;  %v2994_v43 = vpack.c.bf16 %v2267_v42, %v2266_v41 }
 0x415   : > { %v1686_v49 = vpop.f32.mrb[12].mxu1 }
 0x416   : > { %v2778_v50 = vpop.f32.mrb[13].mxu1  ;;  %2798 = vmatmul.mubr.msk.f32.vlgmr.msra.gmra.mrb[24].mxu0 %vm339_vm1, %v1686_v49  ;;  %v3000_v49 = vpack.c.bf16 %v2271_v48, %v2270_v47 }
 0x417   : > { %2965 = vmatpush3.bf16.msra.mxu0 %v2964_v44  ;;  %2819 = vmatprep.mubr.msk.f32.mxu0 %vm3180_vm0, %v3181_v1  ;;  %v2268_v44 = vld [vmem:[%s3660_s5 + $0x50] sm:$0xff] }
 0x418   : > { %2966 = vmatprep.subr.bf16.mxu0 %v3179_v0  ;;  %v2997_v46 = vpack.c.bf16 %v2269_v45, %v2268_v44 }
 0x419   : > { %v1613_v55 = vpop.f32.mrb[20].mxu0 }
 0x41a   : > { %v2773_v56 = vpop.f32.mrb[21].mxu0  ;;  %2809 = vmatmul.mubr.msk.f32.vlgmr.msra.gmra.mrb[16].mxu1 %vm339_vm1, %v1613_v55  ;;  %v2169_v55 = vrot.slane %v3518_v9, %v2168_v53 }
 0x41b   : > { %2971 = vmatpush3.bf16.msra.mxu1 %v2970_v51  ;;  %2968 = vmatpush3.bf16.msra.mxu0 %v2967_v52 }
 0x41c   : > { %2972 = vmatprep.subr.bf16.mxu1 %v3179_v0  ;;  %2830 = vmatprep.mubr.msk.f32.mxu1 %vm3180_vm0, %v3181_v1 }
 0x41d   : > { %v1759_v58 = vpop.f32.mrb[22].mxu0  ;;  %v1832_v59 = vpop.f32.mrb[14].mxu1  ;;  %2975 = vmatprep.subr.bf16.mxu0 %v3179_v0 }
 0x41e   : > { %v2783_v60 = vpop.f32.mrb[23].mxu0  ;;  %v2788_v61 = vpop.f32.mrb[15].mxu1  ;;  %2820 = vmatmul.mubr.msk.f32.vlgmr.msra.gmra.mrb[26].mxu0 %vm339_vm1, %v1759_v58  ;;  %v2174_v58 = vrot.slane %v3518_v9, %v2173_v54 }
 0x41f   : > { %2974 = vmatpush3.bf16.msra.mxu1 %v2973_v57  ;;  %2841 = vmatprep.mubr.msk.f32.mxu0 %vm3180_vm0, %v3181_v1  ;;  %v2273_v61 = vld [vmem:[%s3660_s5 + $0x78] sm:$0xff] }
 0x420   : > { %2981 = vmatprep.subr.bf16.mxu1 %v3179_v0  ;;  %2977 = vmatpush3.bf16.msra.mxu0 %v2976_v26  ;;  %v2365_v26 = vrot.slane %v3518_v9, %v2364_v24 }
 0x421   : > { %2978 = vmatprep.subr.bf16.mxu0 %v3179_v0 }
 0x422   : > { %2831 = vmatmul.mubr.msk.f32.vlgmr.msra.gmra.mrb[18].mxu1 %vm339_vm1, %v1832_v59 }
 0x423   : > { %2876 = vmatprep.mubr.msk.f32.mxu1 %vm3180_vm0, %v3181_v1  ;;  %v2149_v1 = vrot.slane %v3518_v9, %v2148_v7  ;;  %2983 = vmatpush3.bf16.msra.mxu1 %v2982_v32 }
 0x424   : > { %2984 = vmatprep.subr.bf16.mxu1 %v3179_v0 }
 0x427   : > { %2986 = vmatpush3.bf16.msra.mxu1 %v2985_v34 }
 0x428   : > { %2987 = vmatprep.subr.bf16.mxu1 %v3179_v0 }
 0x42b   : > { %2989 = vmatpush3.bf16.msra.mxu1 %v2988_v38 }
 0x42c   : > { %2990 = vmatprep.subr.bf16.mxu1 %v3179_v0 }
 0x42f   : > { %2992 = vmatpush3.bf16.msra.mxu1 %v2991_v40 }
 0x430   : > { %2993 = vmatprep.subr.bf16.mxu1 %v3179_v0 }
 0x433   : > { %2995 = vmatpush3.bf16.msra.mxu1 %v2994_v43 }
 0x434   : > { %2996 = vmatprep.subr.bf16.mxu1 %v3179_v0 }
 0x437   : > { %2998 = vmatpush3.bf16.msra.mxu1 %v2997_v46 }
 0x438   : > { %2999 = vmatprep.subr.bf16.mxu1 %v3179_v0 }
 0x43b   : > { %3001 = vmatpush3.bf16.msra.mxu1 %v3000_v49 }
 0x43c   : > { %3002 = vmatprep.subr.bf16.mxu1 %v3179_v0  ;;  %v2272_v0 = vld [vmem:[%s3660_s5 + $0x70] sm:$0xff] }
 0x43d   : > { %v3003_v62 = vpack.c.bf16 %v2273_v61, %v2272_v0 }
 0x43f   : > { %3004 = vmatpush3.bf16.msra.mxu1 %v3003_v62 }
 0x4e9   : > { %v1921_v63 = vpop.f32.mrb[24].mxu0 }
 0x4ea   : > { %v2799_v2 = vpop.f32.mrb[25].mxu0 }
 0x4ed   : > { %v1994_v4 = vpop.f32.mrb[16].mxu1 }
 0x4ee   : > { %v1995_v5 = vadd.f32 %v1994_v4, %v1921_v63  ;;  %v2810_v6 = vpop.f32.mrb[17].mxu1  ;;  %v2182_v63 = vsub.s32 3, %v3512_v3 }
 0x4f0   : > { %v2183_v2 = vrot.slane %v3518_v9, %v2182_v63 }
 0x4f1   : > { %v2067_v8 = vpop.f32.mrb[26].mxu0 }
 0x4f2   : > { %v2071_v10 = vadd.f32 %v2067_v8, %v1995_v5  ;;  %v2821_v11 = vpop.f32.mrb[27].mxu0  ;;  %v2276_v8 = vsub.s32 4, %v3512_v3 }
 0x4f5   : > { %v2141_v12 = vpop.f32.mrb[18].mxu1 }
 0x4f6   : > { %v2145_v13 = vadd.f32 %v2141_v12, %v2071_v10  ;;  %v2832_v14 = vpop.f32.mrb[19].mxu1  ;;  %v2277_v10 = vrot.slane %v3518_v9, %v2276_v8 }
 0x4f8   : > { %v2150_v15 = vadd.f32 %v2149_v1, %v2145_v13 }
 0x4fa   : > { %v2151_v16 = vadd.f32 %v2150_v15, %v3319_v18  ;;  %v2178_v18 = vld [vmem:[%s3659_s4 + $0x10] sm:$0xff] }
 0x4fb   : > { %v2979_v28 = vpack.c.bf16 %v2179_v27, %v2178_v18 }
 0x4fc   : > { %v2152_v17 = vsel %vm339_vm1, %v2151_v16, 0.0 }
 0x4fd   : > { %2153 = vadd.xlane.f32.xlu0 %v2152_v17  ;;  %2980 = vmatpush3.bf16.msra.mxu0 %v2979_v28  ;;  %v2370_v28 = vrot.slane %v3518_v9, %v2369_v25 }
 0x58a   : > { %v2154_v19 = vpop.xlane.xlu0 %2153 }
 0x58b   : > { %v2156_v20 = vmul.f32 0.03125, %v2154_v19 }
 0x58d   : > { %v2157_v21 = vsub.f32 %v2151_v16, %v2156_v20 }
 0x58f   : > { %v2158_v22 = vmul.f32 %v2157_v21, %v2157_v21 }
 0x591   : > { %v2159_v23 = vsel %vm339_vm1, %v2158_v22, 0.0 }
 0x592   : > { %2160 = vadd.xlane.f32.xlu1 %v2159_v23 }
 0x61f   : > { %v2161_v50 = vpop.xlane.xlu1 %2160 }
 0x620   : > { %v2162_v51 = vmul.f32 0.03125, %v2161_v50 }
 0x622   : > { %v2163_v52 = vadd.f32 1e-05, %v2162_v51 }
 0x624   : > { %3076 = vrsqrt.f32 %v2163_v52 }
 0x62e   : > { %v3077_v56 = vpop.eup %3076 }
 0x62f   : > { %v2165_v57 = vmul.f32 %v3077_v56, %v2157_v21 }
 0x631   : > { %v2170_v59 = vmul.f32 %v2169_v55, %v2165_v57 }
 0x633   : > { %v2175_v60 = vadd.f32 %v2174_v58, %v2170_v59 }
 0x635   : > { %2842 = vmatmul.mubr.msk.f32.vlgmr.msra.gmra.mrb[28].mxu0 %vm339_vm1, %v2175_v60 }
 0x708   : > { %v2253_v4 = vpop.f32.mrb[28].mxu0 }
 0x709   : > { %v2254_v5 = vadd.f32 %v2253_v4, %v2183_v2  ;;  %v2843_v6 = vpop.f32.mrb[29].mxu0 }
 0x70b   : > { %v2257_v7 = vmax.f32 %v2254_v5, 0.0 }
 0x70d   : > { %2877 = vmatmul.mubr.f32.vlgmr.msra.gmra.mrb[20].mxu1 %v2257_v7 }
 0x7e0   : > { %v2344_v11 = vpop.f32.mrb[20].mxu1 }
 0x7e1   : > { %v2345_v1 = vadd.f32 %v2344_v11, %v2277_v10  ;;  %v2878_v12 = vpop.f32.mrb[21].mxu1 }
 0x7e3   : > { %v2348_v13 = vadd.f32 %v2345_v1, %v2175_v60 }
 0x7e5   : > { %v2349_v14 = vsel %vm339_vm1, %v2348_v13, 0.0 }
 0x7e6   : > { %2350 = vadd.xlane.f32.xlu0 %v2349_v14 }
 0x873   : > { %v2351_v15 = vpop.xlane.xlu0 %2350 }
 0x874   : > { %v2352_v16 = vmul.f32 0.03125, %v2351_v15 }
 0x876   : > { %v2353_v17 = vsub.f32 %v2348_v13, %v2352_v16 }
 0x878   : > { %v2354_v19 = vmul.f32 %v2353_v17, %v2353_v17 }
 0x87a   : > { %v2355_v20 = vsel %vm339_vm1, %v2354_v19, 0.0 }
 0x87b   : > { %2356 = vadd.xlane.f32.xlu1 %v2355_v20 }
 0x908   : > { %v2357_v21 = vpop.xlane.xlu1 %2356 }
 0x909   : > { %v2358_v22 = vmul.f32 0.03125, %v2357_v21 }
 0x90b   : > { %v2359_v23 = vadd.f32 1e-05, %v2358_v22 }
 0x90d   : > { %3078 = vrsqrt.f32 %v2359_v23 }
 0x917   : > { %v3079_v18 = vpop.eup %3078 }
 0x918   : > { %v2361_v27 = vmul.f32 %v3079_v18, %v2353_v17 }
 0x91a   : > { %v2366_v29 = vmul.f32 %v2365_v26, %v2361_v27 }
 0x91c   : > { %v2371_v30 = vadd.f32 %v2370_v28, %v2366_v29 }
 0x91e   : > { %2372 = vst.msk [vmem:[%s284_s13] sm:$0xff] %vm339_vm1, %v2371_v30 }
 0x91f   : > { %3121 = shalt.err (!%p3118_p7)
}
 0x920   : > { %s3122_s29 = scalar_lea.hbm %s3612_s19, 128  ;;  %s3126_s14 = scalar_lea.hbm %s3662_s7, 256 }
 0x921   : > { %p3123_p8 = scmp.ne.s32.totalorder %s3612_s19, %s3122_s29  ;;  %p3127_p1 = scmp.lt.u32.totalorder %s3612_s19, %s3662_s7 }
 0x922   : > { %p3128_p0 = scmp.lt.u32.totalorder %s3126_s14, %s3122_s29  ;;  %p3130_p6 = scmp.lt.u32.totalorder %s3122_s29, %s3612_s19 }
 0x923   : > { %p3124_p11 = pnand %p3123_p8, %p3673_p9 }
 0x924   : > { %p3129_p5 = por %p3128_p0, %p3127_p1 }
 0x925   : > { %p3125_p13 = pneg %p3124_p11 }
 0x926   : > { %p3131_p10 = por %p3130_p6, %p3129_p5 }
 0x928   : > { %p3132_p12 = pnand %p3131_p10, %p3125_p13 }
 0x92a   : > { %3135 = shalt.err (!%p3132_p12)
}
 0x92b   : > { %3009 = dma.vmem_to_hbm [thread:$0]  (%p3673_p9), %s3614_s15, 128, %s3612_s19, %s2374_s20  }
 0x92c PF: > { %p3021_p2 = scmp.ge.s32.totalorder %s3174_s27, 2  ;;  %s2399_s16 = sand.u32 1, %s3162_s24  }
 0x92d   : > { %p3674_p3 = scmp.ne.s32.totalorder %s3667_s12, 0  ;;  %s2400_s18 = scalar_lea.sflag [#allocation4], %s2399_s16 }
 0x92f   : > { %p3016_p4 = pnand %p3021_p2, %p3674_p3 }
 0x931   : > { %3157 = dma.done.wait (!%p3016_p4), %s2400_s18, 128  }
 0x932   : > { %3159 = vsyncadd (!%p3016_p4), %s2400_s18, 4294967168  ;;  %p18_p7 = scmp.ge.s32.totalorder %s3248_s30, 4   ;;  %s3675_s24 = smov %s3166_s25 }
 0x933   : > { %s3676_s25 = smov %s3170_s26  ;;  %s3677_s26 = smov %s3259_s10 }
 0x934   : > { %s3678_s27 = smov %s3248_s30  ;;  %20 = sbr.rel (!%p18_p7) target bundleno = 4 (0x4), region = 88 }
 0x93b   :  { %2405 = vsyncpa [#allocation3], 1 }
 0x93c   :  { %2407 = vsyncpa [#allocation3 + $0x1], 1 }
 0x93d   :  { %2408 = vsyncpa [#allocation4], 1 }
 0x93e   :  { %2410 = vsyncpa [#allocation4 + $0x1], 1 }

</bundles_post_ra>
